<compile_context>
chip_gen: v5e
topology: v5e:2x2
jax: 0.10.0
libtpu: 0.0.40
codegen_flags: <defaults>
</compile_context>

<pallas_src>
import functools

import jax
import jax.numpy as jnp
from jax import lax
from jax.experimental import pallas as pl
from jax.experimental.pallas import tpu as pltpu


# ---------------------------------------------------------------------------
# Kernels
# ---------------------------------------------------------------------------

def _mlp(p, w1_ref, b1_ref, w2_ref):
    """Shared-MLP branch; the 2nd Linear's bias is folded in by the caller."""
    h = jnp.dot(p, w1_ref[...].astype(jnp.float32),
                preferred_element_type=jnp.float32)
    h = jnp.maximum(h + b1_ref[...].astype(jnp.float32), 0.0)
    return jnp.dot(h, w2_ref[...].astype(jnp.float32),
                   preferred_element_type=jnp.float32)


def _channel_gate_kernel(x_ref, w1_ref, b1_ref, w2_ref, b2_ref, o_ref, *, hw):
    # x_ref/o_ref: (bt, C, hw); w1: (C, Cr); b1: (1, Cr); w2: (Cr, C); b2: (1, C)
    x = x_ref[...]

    # fp32 pooled statistics without materializing a full fp32 tile copy.
    avg_pool = jnp.sum(x, axis=-1, dtype=jnp.float32) * (1.0 / float(hw))  # (bt,C)
    max_pool = jnp.max(x, axis=-1).astype(jnp.float32)                     # (bt,C)

    att = (_mlp(avg_pool, w1_ref, b1_ref, w2_ref)
           + _mlp(max_pool, w1_ref, b1_ref, w2_ref)
           + 2.0 * b2_ref[...].astype(jnp.float32))
    scale = jax.nn.sigmoid(att)                                            # (bt,C)

    # Multiply in the input dtype (no fp32 full-tile temp before the store).
    o_ref[...] = x * scale.astype(x.dtype)[:, :, None]


def _channel_gate_hw_tiled_kernel(x_ref, w1_ref, b1_ref, w2_ref, b2_ref, o_ref,
                                  sum_ref, max_ref, scale_ref, *, hw, thw):
    # Fallback for shapes where one (C, hw) slab does not fit in VMEM.
    # grid = (batch, phase, hw_tile): phase 0 accumulates pooled stats into
    # VMEM scratch, phase 1 computes the gate once and applies it per tile.
    phase = pl.program_id(1)
    j = pl.program_id(2)
    x = x_ref[...]                                            # (1, C, thw)

    @pl.when(phase == 0)
    def _():
        @pl.when(j == 0)
        def _():
            sum_ref[...] = jnp.zeros(sum_ref.shape, sum_ref.dtype)
            max_ref[...] = jnp.full(max_ref.shape, -jnp.inf, max_ref.dtype)
        # Mask the ragged spatial tail tile (hw may not be a multiple of thw).
        lane = lax.broadcasted_iota(jnp.int32, (1, 1, thw), 2) + j * thw
        valid = lane < hw
        xf = x.astype(jnp.float32)
        sum_ref[...] += jnp.sum(jnp.where(valid, xf, 0.0), axis=-1)
        max_ref[...] = jnp.maximum(
            max_ref[...], jnp.max(jnp.where(valid, xf, -jnp.inf), axis=-1))
        o_ref[...] = x        # placeholder write; overwritten in phase 1

    @pl.when(phase == 1)
    def _():
        @pl.when(j == 0)
        def _():
            avg_pool = sum_ref[...] * (1.0 / float(hw))
            att = (_mlp(avg_pool, w1_ref, b1_ref, w2_ref)
                   + _mlp(max_ref[...], w1_ref, b1_ref, w2_ref)
                   + 2.0 * b2_ref[...].astype(jnp.float32))
            scale_ref[...] = jax.nn.sigmoid(att)
        o_ref[...] = x * scale_ref[...].astype(x.dtype)[:, :, None]


# ---------------------------------------------------------------------------
# Wrapper
# ---------------------------------------------------------------------------

def _vmem_info():
    cap = 64 << 20
    try:
        info = pltpu.get_tpu_info()
        cap = int(getattr(info, "vmem_capacity_bytes", cap) or cap)
    except Exception:
        pass
    # I/O-tile budget: generous on 128 MiB-VMEM parts (v5e/v6e), leaner on
    # v7x (64 MiB physical).
    io_budget = (64 << 20) if cap >= (96 << 20) else (24 << 20)
    return io_budget, cap


def channel_gate(x, w1, b1, w2, b2, *, io_budget_bytes=None):
    """x: (B, C, H, W); weights pre-transposed to (in, out); biases (1, out)."""
    B, C, H, W = x.shape
    hw = H * W
    x3 = x.reshape(B, C, hw)

    auto_budget, vmem_cap = _vmem_info()
    if io_budget_bytes is None:
        io_budget_bytes = auto_budget

    dtype_bytes = jnp.dtype(x.dtype).itemsize
    weight_bytes = sum(int(a.size) * jnp.dtype(a.dtype).itemsize
                       for a in (w1, b1, w2, b2))
    per_row = C * hw * dtype_bytes                      # one batch row, unpadded

    cr = w1.shape[1]
    flops = 2 * (2 * B) * (C * cr + cr * C)             # tiny two-branch MLP
    transcendentals = B * C                             # sigmoid

    # ------------------------------------------------------------- main path
    # input + output tiles, each double-buffered by the pipeline -> 4x tile.
    bt_cap = io_budget_bytes // (4 * per_row)
    if bt_cap >= 1:
        min_steps = min(B, 4)          # >=2 grid steps: pipelining + v7x 2 TCs
        bt = max(1, min(B, int(bt_cap), pl.cdiv(B, min_steps)))
        grid = (pl.cdiv(B, bt),)
        tile_bytes = bt * per_row
        vmem_limit = min(vmem_cap,
                         max(16 << 20, 4 * tile_bytes + 2 * weight_bytes + (4 << 20)))

        cost = pl.CostEstimate(flops=flops, transcendentals=transcendentals,
                               bytes_accessed=2 * B * per_row + weight_bytes)

        kernel = functools.partial(_channel_gate_kernel, hw=hw)
        out = pl.pallas_call(
            kernel,
            out_shape=jax.ShapeDtypeStruct((B, C, hw), x.dtype),
            grid_spec=pltpu.PrefetchScalarGridSpec(
                num_scalar_prefetch=0,
                grid=grid,
                in_specs=[
                    pl.BlockSpec((bt, C, hw), lambda i: (i, 0, 0)),
                    # Weights/biases: constant index_map -> VMEM-resident.
                    pl.BlockSpec(w1.shape, lambda i: (0, 0)),
                    pl.BlockSpec(b1.shape, lambda i: (0, 0)),
                    pl.BlockSpec(w2.shape, lambda i: (0, 0)),
                    pl.BlockSpec(b2.shape, lambda i: (0, 0)),
                ],
                out_specs=pl.BlockSpec((bt, C, hw), lambda i: (i, 0, 0)),
            ),
            compiler_params=pltpu.CompilerParams(
                dimension_semantics=("parallel",),
                vmem_limit_bytes=int(vmem_limit),
            ),
            cost_estimate=cost,
        )(x3, w1, b1, w2, b2)
        return out.reshape(B, C, H, W)

    # ------------------------------------------------------ hw-tiled fallback
    # A single (C, hw) slab does not fit: tile the spatial axis on an inner
    # 'arbitrary' grid axis with a reduce phase and an apply phase.
    thw_cap = max(1, io_budget_bytes // (8 * C * max(dtype_bytes, 4)))
    thw = max(128, (thw_cap // 128) * 128)
    thw = min(thw, ((hw + 127) // 128) * 128)
    nhw = pl.cdiv(hw, thw)
    grid = (B, 2, nhw)
    tile_bytes = C * thw * dtype_bytes
    vmem_limit = min(vmem_cap,
                     max(16 << 20,
                         4 * tile_bytes + 4 * C * thw * 4 + 2 * weight_bytes + (4 << 20)))

    cost = pl.CostEstimate(flops=flops, transcendentals=transcendentals,
                           bytes_accessed=4 * B * per_row + weight_bytes)

    kernel = functools.partial(_channel_gate_hw_tiled_kernel, hw=hw, thw=thw)
    out = pl.pallas_call(
        kernel,
        out_shape=jax.ShapeDtypeStruct((B, C, hw), x.dtype),
        grid_spec=pltpu.PrefetchScalarGridSpec(
            num_scalar_prefetch=0,
            grid=grid,
            in_specs=[
                pl.BlockSpec((1, C, thw), lambda i, p, j: (i, 0, j)),
                pl.BlockSpec(w1.shape, lambda i, p, j: (0, 0)),
                pl.BlockSpec(b1.shape, lambda i, p, j: (0, 0)),
                pl.BlockSpec(w2.shape, lambda i, p, j: (0, 0)),
                pl.BlockSpec(b2.shape, lambda i, p, j: (0, 0)),
            ],
            out_specs=pl.BlockSpec((1, C, thw), lambda i, p, j: (i, 0, j)),
            scratch_shapes=[
                pltpu.VMEM((1, C), jnp.float32),   # running sum
                pltpu.VMEM((1, C), jnp.float32),   # running max
                pltpu.VMEM((1, C), jnp.float32),   # sigmoid scale
            ],
        ),
        compiler_params=pltpu.CompilerParams(
            dimension_semantics=("parallel", "arbitrary", "arbitrary"),
            vmem_limit_bytes=int(vmem_limit),
        ),
        cost_estimate=cost,
    )(x3, w1, b1, w2, b2)
    return out.reshape(B, C, H, W)


# ---------------------------------------------------------------------------
# Pure-JAX reference (mirrors the PyTorch forward)
# ---------------------------------------------------------------------------

def reference_channel_gate(x, w1, b1, w2, b2):
    B, C, H, W = x.shape
    xf = x.reshape(B, C, H * W)
    avg_pool = jnp.mean(xf, axis=-1)
    max_pool = jnp.max(xf, axis=-1)

    def mlp(p):
        h = jnp.maximum(p @ w1 + b1, 0.0)
        return h @ w2 + b2

    att = mlp(avg_pool) + mlp(max_pool)
    scale = jax.nn.sigmoid(att)
    return x * scale[:, :, None, None]


if __name__ == "__main__":
    # Shapes consistent with the module: gate_channels=32, reduction_ratio=16.
    B, C = 2, 32
    reduction_ratio = 16
    Cr = C // reduction_ratio  # = 2

    key = jax.random.PRNGKey(0)
    kx, kw1, kb1, kw2, kb2 = jax.random.split(key, 5)

    # PyTorch Linear stores (out, in); we pass the transpose (in, out).
    w1 = jax.random.normal(kw1, (C, Cr), dtype=jnp.float32) * 0.2
    b1 = jax.random.normal(kb1, (1, Cr), dtype=jnp.float32) * 0.1
    w2 = jax.random.normal(kw2, (Cr, C), dtype=jnp.float32) * 0.2
    b2 = jax.random.normal(kb2, (1, C), dtype=jnp.float32) * 0.1

    # 1) Main path, spatial size a multiple of 128 (16*16 = 256).
    x1 = jax.random.normal(kx, (B, C, 16, 16), dtype=jnp.float32)
    out1 = jax.block_until_ready(channel_gate(x1, w1, b1, w2, b2))
    ref1 = reference_channel_gate(x1, w1, b1, w2, b2)
    assert out1.shape == x1.shape
    assert jnp.allclose(out1, ref1, atol=1e-5, rtol=1e-5), "mismatch (16x16)"

    # 2) Main path, spatial size NOT a multiple of 128 (14*14 = 196).
    x2 = jax.random.normal(jax.random.fold_in(kx, 1), (B, C, 14, 14),
                           dtype=jnp.float32)
    out2 = jax.block_until_ready(channel_gate(x2, w1, b1, w2, b2))
    ref2 = reference_channel_gate(x2, w1, b1, w2, b2)
    assert jnp.allclose(out2, ref2, atol=1e-5, rtol=1e-5), "mismatch (14x14)"

    # 3) hw-tiled fallback (forced via a tiny I/O budget): exercises the
    #    two-phase reduce/apply kernel and the ragged spatial-tail masking.
    out3 = jax.block_until_ready(
        channel_gate(x2, w1, b1, w2, b2, io_budget_bytes=64 << 10))
    assert jnp.allclose(out3, ref2, atol=1e-5, rtol=1e-5), "mismatch (fallback)"

    print("KERNEL_OK")
</pallas_src>

<mosaic_0001>
module attributes {stable_mosaic.version = 11 : i64} {
  func.func @_channel_gate_kernel(%arg0: i32, %arg1: memref<1x32x256xf32, #tpu.memory_space<vmem>>, %arg2: memref<32x2xf32, #tpu.memory_space<vmem>>, %arg3: memref<1x2xf32, #tpu.memory_space<vmem>>, %arg4: memref<2x32xf32, #tpu.memory_space<vmem>>, %arg5: memref<1x32xf32, #tpu.memory_space<vmem>>, %arg6: memref<1x32x256xf32, #tpu.memory_space<vmem>>) attributes {dimension_semantics = [#tpu.dimension_semantics<parallel>], iteration_bounds = array<i64: 2>, scalar_prefetch = 0 : i64, scratch_operands = 0 : i64, tpu.core_type = #tpu.core_type<tc>, window_params = [{transform_indices = @transform_0, window_bounds = array<i64: 1, 32, 256>}, {pipeline_mode = #tpu.pipeline_mode<synchronous>, transform_indices = @transform_1, window_bounds = array<i64: 32, 2>}, {pipeline_mode = #tpu.pipeline_mode<synchronous>, transform_indices = @transform_2, window_bounds = array<i64: 1, 2>}, {pipeline_mode = #tpu.pipeline_mode<synchronous>, transform_indices = @transform_3, window_bounds = array<i64: 2, 32>}, {pipeline_mode = #tpu.pipeline_mode<synchronous>, transform_indices = @transform_4, window_bounds = array<i64: 1, 32>}, {transform_indices = @transform_5, window_bounds = array<i64: 1, 32, 256>}]} {
    %c0 = arith.constant 0 : index
    %c0_0 = arith.constant 0 : index
    %c0_1 = arith.constant 0 : index
    %0 = vector.load %arg1[%c0, %c0_0, %c0_1] : memref<1x32x256xf32, #tpu.memory_space<vmem>>, vector<1x32x256xf32>
    %cst = arith.constant dense<0.000000e+00> : vector<1x32xf32>
    %1 = vector.multi_reduction <add>, %0, %cst [2] : vector<1x32x256xf32> to vector<1x32xf32>
    %cst_2 = arith.constant 3.906250e-03 : f32
    %2 = vector.broadcast %cst_2 : f32 to vector<1x32xf32>
    %3 = arith.mulf %1, %2 : vector<1x32xf32>
    %cst_3 = arith.constant dense<0xFF800000> : vector<1x32xf32>
    %4 = vector.multi_reduction <maximumf>, %0, %cst_3 [2] : vector<1x32x256xf32> to vector<1x32xf32>
    %c0_4 = arith.constant 0 : index
    %c0_5 = arith.constant 0 : index
    %5 = vector.load %arg2[%c0_4, %c0_5] : memref<32x2xf32, #tpu.memory_space<vmem>>, vector<32x2xf32>
    %cst_6 = arith.constant dense<0.000000e+00> : vector<1x2xf32>
    %6 = tpu.matmul %3, %5, %cst_6 {dimension_numbers = #tpu.dot_dimension_numbers<[1], [0], [0], [1], [0, 0, 1, 1], [], []>} : vector<1x32xf32>, vector<32x2xf32>, vector<1x2xf32> -> vector<1x2xf32>
    %c0_7 = arith.constant 0 : index
    %c0_8 = arith.constant 0 : index
    %7 = vector.load %arg3[%c0_7, %c0_8] : memref<1x2xf32, #tpu.memory_space<vmem>>, vector<1x2xf32>
    %8 = arith.addf %6, %7 : vector<1x2xf32>
    %cst_9 = arith.constant 0.000000e+00 : f32
    %9 = vector.broadcast %cst_9 : f32 to vector<1x2xf32>
    %10 = arith.maximumf %8, %9 : vector<1x2xf32>
    %c0_10 = arith.constant 0 : index
    %c0_11 = arith.constant 0 : index
    %11 = vector.load %arg4[%c0_10, %c0_11] : memref<2x32xf32, #tpu.memory_space<vmem>>, vector<2x32xf32>
    %cst_12 = arith.constant dense<0.000000e+00> : vector<1x32xf32>
    %12 = tpu.matmul %10, %11, %cst_12 {dimension_numbers = #tpu.dot_dimension_numbers<[1], [0], [0], [1], [0, 0, 1, 1], [], []>} : vector<1x2xf32>, vector<2x32xf32>, vector<1x32xf32> -> vector<1x32xf32>
    %c0_13 = arith.constant 0 : index
    %c0_14 = arith.constant 0 : index
    %13 = vector.load %arg2[%c0_13, %c0_14] : memref<32x2xf32, #tpu.memory_space<vmem>>, vector<32x2xf32>
    %cst_15 = arith.constant dense<0.000000e+00> : vector<1x2xf32>
    %14 = tpu.matmul %4, %13, %cst_15 {dimension_numbers = #tpu.dot_dimension_numbers<[1], [0], [0], [1], [0, 0, 1, 1], [], []>} : vector<1x32xf32>, vector<32x2xf32>, vector<1x2xf32> -> vector<1x2xf32>
    %c0_16 = arith.constant 0 : index
    %c0_17 = arith.constant 0 : index
    %15 = vector.load %arg3[%c0_16, %c0_17] : memref<1x2xf32, #tpu.memory_space<vmem>>, vector<1x2xf32>
    %16 = arith.addf %14, %15 : vector<1x2xf32>
    %cst_18 = arith.constant 0.000000e+00 : f32
    %17 = vector.broadcast %cst_18 : f32 to vector<1x2xf32>
    %18 = arith.maximumf %16, %17 : vector<1x2xf32>
    %c0_19 = arith.constant 0 : index
    %c0_20 = arith.constant 0 : index
    %19 = vector.load %arg4[%c0_19, %c0_20] : memref<2x32xf32, #tpu.memory_space<vmem>>, vector<2x32xf32>
    %cst_21 = arith.constant dense<0.000000e+00> : vector<1x32xf32>
    %20 = tpu.matmul %18, %19, %cst_21 {dimension_numbers = #tpu.dot_dimension_numbers<[1], [0], [0], [1], [0, 0, 1, 1], [], []>} : vector<1x2xf32>, vector<2x32xf32>, vector<1x32xf32> -> vector<1x32xf32>
    %21 = arith.addf %12, %20 : vector<1x32xf32>
    %c0_22 = arith.constant 0 : index
    %c0_23 = arith.constant 0 : index
    %22 = vector.load %arg5[%c0_22, %c0_23] : memref<1x32xf32, #tpu.memory_space<vmem>>, vector<1x32xf32>
    %cst_24 = arith.constant 2.000000e+00 : f32
    %23 = vector.broadcast %cst_24 : f32 to vector<1x32xf32>
    %24 = arith.mulf %23, %22 : vector<1x32xf32>
    %25 = arith.addf %21, %24 : vector<1x32xf32>
    %26 = arith.negf %25 : vector<1x32xf32>
    %27 = math.exp %26 : vector<1x32xf32>
    %cst_25 = arith.constant 1.000000e+00 : f32
    %28 = vector.broadcast %cst_25 : f32 to vector<1x32xf32>
    %29 = arith.addf %28, %27 : vector<1x32xf32>
    %30 = arith.divf %28, %29 : vector<1x32xf32>
    %31 = vector.shape_cast %30 : vector<1x32xf32> to vector<1x32x1xf32>
    %32 = vector.broadcast %31 : vector<1x32x1xf32> to vector<1x32x256xf32>
    %33 = arith.mulf %0, %32 : vector<1x32x256xf32>
    %c0_26 = arith.constant 0 : index
    %c0_27 = arith.constant 0 : index
    %c0_28 = arith.constant 0 : index
    %34 = vector.load %arg6[%c0_26, %c0_27, %c0_28] : memref<1x32x256xf32, #tpu.memory_space<vmem>>, vector<1x32x256xf32>
    tpu.vector_store %arg6[%c0_26, %c0_27, %c0_28], %33 {strides = array<i32>} : memref<1x32x256xf32, #tpu.memory_space<vmem>>, vector<1x32x256xf32>,
    return
  }
  func.func @transform_0(%arg0: i32) -> (i32, i32, i32) {
    %c0_i32 = arith.constant 0 : i32
    %c0_i32_0 = arith.constant 0 : i32
    %c0_i32_1 = arith.constant 0 : i32
    return %arg0, %c0_i32, %c0_i32_0 : i32, i32, i32
  }
  func.func @transform_1(%arg0: i32) -> (i32, i32) {
    %c0_i32 = arith.constant 0 : i32
    %c0_i32_0 = arith.constant 0 : i32
    %c0_i32_1 = arith.constant 0 : i32
    return %c0_i32, %c0_i32_0 : i32, i32
  }
  func.func @transform_2(%arg0: i32) -> (i32, i32) {
    %c0_i32 = arith.constant 0 : i32
    %c0_i32_0 = arith.constant 0 : i32
    %c0_i32_1 = arith.constant 0 : i32
    return %c0_i32, %c0_i32_0 : i32, i32
  }
  func.func @transform_3(%arg0: i32) -> (i32, i32) {
    %c0_i32 = arith.constant 0 : i32
    %c0_i32_0 = arith.constant 0 : i32
    %c0_i32_1 = arith.constant 0 : i32
    return %c0_i32, %c0_i32_0 : i32, i32
  }
  func.func @transform_4(%arg0: i32) -> (i32, i32) {
    %c0_i32 = arith.constant 0 : i32
    %c0_i32_0 = arith.constant 0 : i32
    %c0_i32_1 = arith.constant 0 : i32
    return %c0_i32, %c0_i32_0 : i32, i32
  }
  func.func @transform_5(%arg0: i32) -> (i32, i32, i32) {
    %c0_i32 = arith.constant 0 : i32
    %c0_i32_0 = arith.constant 0 : i32
    %c0_i32_1 = arith.constant 0 : i32
    return %arg0, %c0_i32, %c0_i32_0 : i32, i32, i32
  }
}

</mosaic_0001>

<bundles_post_ra>
// kernel: tpu_custom_call.1
= control target key start
LH: loop header
LB: loop body
LE: loop exit
PB: predicated region body
PF: predicated region fallthrough
CT: control target
= control target key end

     0   :  { %10 = vsyncpa [#allocation3], 0  ;;  %s975_s0 = inlined_call_operand.hbm [shape: f32[2,32,256], index: 0, kind: input, shape index: {}]   ;;  %s976_s1 = inlined_call_operand.vmem [shape: f32[32,2], index: 1, kind: input, shape index: {}]   ;;  %s977_s2 = inlined_call_operand.vmem [shape: f32[1,2], index: 2, kind: input, shape index: {}]   ;;  %s978_s3 = inlined_call_operand.vmem [shape: f32[2,32], index: 3, kind: input, shape index: {}]   ;;  %s979_s4 = inlined_call_operand.vmem [shape: f32[1,32], index: 4, kind: input, shape index: {}]   ;;  %s980_s5 = inlined_call_operand.hbm [shape: f32[2,32,256], index: 5, kind: output, shape index: {}]  }
   0x1   :  { %12 = vsyncpa [#allocation3 + $0x1], 0 }
   0x2   :  { %13 = vsyncpa [#allocation4], 0 }
   0x3   :  { %15 = vsyncpa [#allocation4 + $0x1], 0  ;;  %s781_s18 = smov 0   ;;  %s783_s19 = smov 0  }
   0x4   :  { %s785_s20 = smov 0   ;;  %s787_s21 = smov 0  }
   0x5 LB: > { %s802_s22 = sadd.s32 4294967295, %s745_s21   ;;  %s567_s23 = sadd.s32 4294967294, %s745_s21   ;;  %s745_s21 = sphi %s787_s21, %s990_s21   ;;  %s741_s20 = sphi %s785_s20, %s989_s20   ;;  %s737_s19 = sphi %s783_s19, %s988_s19   ;;  %s733_s18 = sphi %s781_s18, %s987_s18  }
   0x6   : > { %s806_s24 = sadd.s32 1, %s745_s21   ;;  %s28_s25 = sadd.s32 1, %s741_s20 }
   0x7   : > { %s25_s26 = ssub.s32 %s745_s21, %s806_s24  ;;  %p35_p0 = scmp.ne.s32.totalorder %s741_s20, %s737_s19 }
   0x8   : > { %p26_p1 = scmp.eq.s32.totalorder %s25_s26, 0  ;;  %p36_p2 = scmp.eq.s32.totalorder %s745_s21, 0 }
   0x9   : > { %p41_p3 = scmp.ne.s32.totalorder %s737_s19, %s733_s18  ;;  %p42_p4 = scmp.eq.s32.totalorder %s802_s22, 0 }
   0xa   : > { %s818_s27 = scalar_select %p26_p1, %s741_s20, %s28_s25  }
   0xb   : > { %p820_p5 = por %p36_p2, %p35_p0  ;;  %p824_p6 = por %p42_p4, %p41_p3 }
   0xc   : > { %p149_p7 = scmp.eq.s32.totalorder %s802_s22, 1  ;;  %p155_p8 = scmp.eq.s32.totalorder %s567_s23, 1 }
   0xd   : > { %p602_p10 = scmp.lt.s32.totalorder %s745_s21, 2  ;;  %s187_s7 = sand.u32 1, %s741_s20  }
   0xe   : > { %p831_p11 = por %p149_p7, %p35_p0  ;;  %p835_p12 = por %p155_p8, %p41_p3 }
   0xf   : > { %s588_s8 = sshll.u32 %s745_s21, 6  ;;  %s570_s9 = sshll.u32 %s187_s7, 6 }
  0x10   : > { %s196_s12 = scalar_lea.hbm %s975_s0, %s588_s8  ;;  %s191_s14 = scalar_lea.vmem [#allocation2], %s570_s9 }
  0x11   : > { %s197_s13 = sshll.u32 %s196_s12, 4  ;;  %s199_s15 = sshll.u32 %s191_s14, 4  ;;  %s198_s13 = int_to_ptr.hbm [resolvable:$true] %s197_s13  ;;  %s200_s15 = int_to_ptr.vmem [resolvable:$true] %s199_s15 }
  0x12   : > { %p846_p13 = pnand %p602_p10, %p820_p5  ;;  %p573_p0 = scmp.ge.s32.totalorder %s745_s21, 1 }
  0x13   : > { %p207_p1 = scmp.lt.s32.totalorder %s745_s21, 3  ;;  %s188_s17 = scalar_lea.sflag [#allocation3], %s187_s7 }
  0x14   : > { %s649_s23 = sshra.s32 %s198_s13, 4  ;;  %p653_p3 = pneg %p846_p13  ;;  %s650_s23 = int_to_ptr.hbm [resolvable:$true] %s649_s23 }
  0x15   : > { %s651_s25 = scalar_lea.hbm %s650_s23, 64  ;;  %s656_s28 = scalar_lea.hbm %s975_s0, 128 }
  0x16   : > { %p652_p2 = scmp.ne.s32.totalorder %s650_s23, %s651_s25  ;;  %p657_p5 = scmp.lt.s32.totalorder %s650_s23, %s975_s0 }
  0x17   : > { %p658_p8 = scmp.lt.s32.totalorder %s656_s28, %s651_s25 }
  0x18   : > { %p654_p4 = pnand %p653_p3, %p652_p2 }
  0x19   : > { %p659_p10 = por %p658_p8, %p657_p5 }
  0x1a   : > { %p655_p7 = pneg %p654_p4 }
  0x1c   : > { %p660_p9 = pnand %p659_p10, %p655_p7 }
  0x1e   : > { %663 = shalt.err (!%p660_p9)
}
  0x1f   : > { %s747_s7 = smov 256   ;;  %s748_s11 = smov 16  }
  0x20   : > { %597 = dma.hbm_to_vmem [thread:$0]  (!%p846_p13), %s198_s13, 1024, %s200_s15, %s188_s17, %s747_s7, %s747_s7, %s748_s11  }
  0x21   : > { %p208_p2 = pnand %p573_p0, %p207_p1 }
  0x22   : > { %s867_s12 = sand.u32 (!%p208_p2), 1, %s737_s19  }
  0x23   : > { %211 = sbr.rel (%p208_p2) target bundleno = 600 (0x258), region = 40  ;;  %s574_s14 = sshll.u32 (!%p208_p2), %s867_s12, 6 }
  0x24   : > { %s214_s23 = scalar_lea.sflag (!%p208_p2), [#allocation3], %s867_s12  ;;  %s217_s25 = scalar_lea.vmem (!%p208_p2), [#allocation2], %s574_s14 }
  0x28   : > { %724 = dma.done.wait (%p824_p6), %s214_s23, 1024  }
  0x29   : > { %726 = vsyncadd (%p824_p6), %s214_s23, 4294966272  ;;  %v877_v0 = vld [vmem:[%s217_s25] sm:$0xff]  ;;  %v879_v1 = vld [vmem:[%s217_s25 + $0x8] sm:$0xff]  ;;  %v290_v20 = vlaneseq  ;;  %vm299_vm0 = vcmask 195712   ;;  %vm295_vm1 = vcmask 130112   ;;  %vm303_vm2 = vcmask 261312  }
  0x2a   : > { %v881_v2 = vld [vmem:[%s217_s25 + $0x20] sm:$0xff]  ;;  %v269_v3 = vmax.f32 %v877_v0, %v879_v1  ;;  %v253_v4 = vadd.f32 %v879_v1, %v877_v0  ;;  %v887_v5 = vld [vmem:[%s217_s25 + $0x28] sm:$0xff]  ;;  %v891_v7 = vld [vmem:[%s217_s25 + $0x10] sm:$0xff]  ;;  %vm305_vm3 = vcmask 261120   ;;  %vm368_vm4 = vcmask 1041408   ;;  %s244_s29 = scalar_lea.vmem [#allocation5], %s574_s14 }
  0x2b   : > { %v259_v6 = vadd.f32 %v887_v5, %v881_v2  ;;  %v893_v8 = vld [vmem:[%s217_s25 + $0x18] sm:$0xff]  ;;  %v895_v9 = vld [vmem:[%s217_s25 + $0x30] sm:$0xff]  ;;  %v275_v14 = vmax.f32 %v881_v2, %v887_v5  ;;  %v282_v18 = vld [vmem:[%s976_s1 + $0x8] sm:$0xff]  ;;  %v291_v24 = vand.u32 127, %v290_v20  ;;  %vm364_vm5 = vcmask 15360   ;;  %s589_s13 = sshll.u32 %s802_s22, 6 }
  0x2c   : > { %270 = vmax.xlane.f32.xlu2 %v269_v3  ;;  %254 = vadd.xlane.f32.xlu0 %v253_v4  ;;  %v897_v10 = vld [vmem:[%s217_s25 + $0x38] sm:$0xff]  ;;  %v272_v11 = vmax.f32 %v891_v7, %v893_v8  ;;  %v256_v12 = vadd.f32 %v893_v8, %v891_v7  ;;  %v283_v17 = vld [vmem:[%s976_s1 + $0x10] sm:$0xff]  ;;  %v281_v19 = vld [vmem:[%s976_s1] sm:$0xff]  ;;  %v439_v59 = vshrl.u32 %v290_v20, 7  ;;  %s490_s17 = scalar_lea.hbm %s980_s5, %s589_s13  ;;  %s491_s26 = sshll.u32 %s244_s29, 4  ;;  %s492_s26 = int_to_ptr.vmem [resolvable:$true] %s491_s26 }
  0x2d   : > { %260 = vadd.xlane.f32.xlu1 %v259_v6  ;;  %v262_v13 = vadd.f32 %v897_v10, %v895_v9  ;;  %v278_v15 = vmax.f32 %v895_v9, %v897_v10  ;;  %v284_v16 = vld [vmem:[%s976_s1 + $0x18] sm:$0xff]  ;;  %v297_v26 = vadd.s32 4294967280, %v291_v24  ;;  %v301_v29 = vadd.s32 4294967272, %v291_v24  ;;  %v329_v51 = vld [vmem:[%s978_s3] sm:$0x3]  ;;  %s493_s8 = sshll.u32 %s490_s17, 4  ;;  %s494_s8 = int_to_ptr.hbm [resolvable:$true] %s493_s8 }
  0x2e   : > { %320 = vmatpush.msra.mxu0 %v284_v16  ;;  %355 = vmatpush.msra.mxu1 %v284_v16  ;;  %v293_v30 = vadd.s32 4294967288, %v291_v24  ;;  %v285_v52 = vld [vmem:[%s977_s2] sm:$0x1]  ;;  %v452_v60 = vadd.s32 16, %v439_v59  ;;  %v446_v61 = vadd.s32 8, %v439_v59  ;;  %s479_s22 = scalar_lea.sflag [#allocation4], %s867_s12 }
  0x2f   : > { %580 = vmatpush.msk.msra.mxu3 %vm368_vm4, %v329_v51  ;;  %578 = vmatpush.msk.msra.mxu2 %vm368_vm4, %v329_v51  ;;  %v415_v62 = vld [vmem:[%s979_s4] sm:$0x1]  ;;  %s693_s14 = sshra.s32 %s494_s8, 4  ;;  %s699_s7 = scalar_lea.hbm %s980_s5, 128  ;;  %s694_s14 = int_to_ptr.hbm [resolvable:$true] %s693_s14 }
  0x30   : > { %321 = vmatpush.msra.mxu0 %v283_v17  ;;  %356 = vmatpush.msra.mxu1 %v283_v17  ;;  %v416_v63 = vmul.f32 2.0, %v415_v62  ;;  %s695_s28 = scalar_lea.hbm %s694_s14, 64  ;;  %p700_p0 = scmp.lt.s32.totalorder %s694_s14, %s980_s5 }
  0x31   : > { %640 = vset.pattern.permute.xlu2 %v439_v59  ;;  %642 = vset.pattern.permute.xlu1 %v452_v60  ;;  %p696_p6 = scmp.ne.s32.totalorder %s694_s14, %s695_s28  ;;  %p701_p1 = scmp.lt.s32.totalorder %s699_s7, %s695_s28 }
  0x32   : > { %322 = vmatpush.msra.mxu0 %v282_v18  ;;  %357 = vmatpush.msra.mxu1 %v282_v18 }
  0x33   : > { %641 = vset.pattern.permute.xlu0 %v446_v61  ;;  %p697_p9 = pnand %p696_p6, %p831_p11  ;;  %p702_p3 = por %p701_p1, %p700_p0 }
  0x34   : > { %273 = vmax.xlane.f32.xlu2 %v272_v11  ;;  %257 = vadd.xlane.f32.xlu0 %v256_v12 }
  0x35   : > { %263 = vadd.xlane.f32.xlu1 %v262_v13  ;;  %323 = vmatpush.msra.mxu0 %v281_v19  ;;  %p698_p13 = pneg %p697_p9 }
  0x36   : > { %358 = vmatpush.msra.mxu1 %v281_v19 }
  0x37   : > { %p703_p4 = pnand %p702_p3, %p698_p13 }
  0x3c   : > { %276 = vmax.xlane.f32.xlu0 %v275_v14 }
  0x3d   : > { %279 = vmax.xlane.f32.xlu1 %v278_v15 }
  0x9f   : > { %v255_v21 = vpop.xlane.xlu0 %254  ;;  %v271_v22 = vpop.xlane.xlu2 %270 }
  0xa0   : > { %v261_v23 = vpop.xlane.xlu1 %260  ;;  %v265_v25 = vmul.f32 0.00390625, %v255_v21  ;;  %v334_v40 = vperm.slane %v271_v22, %v291_v24 }
  0xa1   : > { %v267_v27 = vmul.f32 0.00390625, %v261_v23 }
  0xa2   : > { %v292_v34 = vperm.slane %v265_v25, %v291_v24 }
  0xa3   : > { %v298_v37 = vperm.slane %v267_v27, %v297_v26 }
  0xa7   : > { %v258_v28 = vpop.xlane.xlu0 %257  ;;  %v274_v35 = vpop.xlane.xlu2 %273 }
  0xa8   : > { %v266_v31 = vmul.f32 0.00390625, %v258_v28  ;;  %v264_v32 = vpop.xlane.xlu1 %263  ;;  %v335_v41 = vperm.slane %v274_v35, %v293_v30 }
  0xa9   : > { %v268_v33 = vmul.f32 0.00390625, %v264_v32 }
  0xaa   : > { %v294_v36 = vperm.slane %v266_v31, %v293_v30  ;;  %v336_v47 = vsel %vm295_vm1, %v335_v41, %v334_v40 }
  0xab   : > { %v302_v38 = vperm.slane %v268_v33, %v301_v29 }
  0xac   : > { %v296_v39 = vsel %vm295_vm1, %v294_v36, %v292_v34 }
  0xad   : > { %v300_v42 = vsel %vm299_vm0, %v298_v37, %v296_v39 }
  0xae   : > { %v304_v43 = vsel %vm303_vm2, %v302_v38, %v300_v42 }
  0xaf   : > { %576 = vmatmul.msk.f32.vlgmr.msra.gmra.mxu0 %vm305_vm3, %v304_v43  ;;  %v277_v44 = vpop.xlane.xlu0 %276 }
  0xb0   : > { %v337_v45 = vperm.slane %v277_v44, %v297_v26  ;;  %v280_v46 = vpop.xlane.xlu1 %279  ;;  %v458_v26 = vadd.s32 24, %v439_v59 }
  0xb1   : > { %v339_v48 = vperm.slane %v280_v46, %v301_v29 }
  0xb2   : > { %v338_v49 = vsel %vm299_vm0, %v337_v45, %v336_v47 }
  0xb3   : > { %v340_v50 = vsel %vm303_vm2, %v339_v48, %v338_v49 }
  0xb4   : > { %577 = vmatmul.msk.f32.vlgmr.msra.gmra.mxu1 %vm305_vm3, %v340_v50 }
 0x12c   : > { %v325_v53 = vpop.f32.mrf.mxu0 }
 0x12d   : > { %v326_v54 = vadd.f32 %v325_v53, %v285_v52 }
 0x12f   : > { %v328_v55 = vmax.f32 %v326_v54, 0.0 }
 0x131   : > { %v360_v56 = vpop.f32.mrf.mxu1  ;;  %581 = vmatmul.msk.f32.vlgmr.msra.gmra.mxu3 %vm364_vm5, %v328_v55 }
 0x132   : > { %v361_v57 = vadd.f32 %v360_v56, %v285_v52 }
 0x134   : > { %v363_v58 = vmax.f32 %v361_v57, 0.0 }
 0x136   : > { %579 = vmatmul.msk.f32.vlgmr.msra.gmra.mxu2 %vm364_vm5, %v363_v58 }
 0x1b4   : > { %v412_v3 = vpop.f32.mrf.mxu3 }
 0x1b9   : > { %v389_v4 = vpop.f32.mrf.mxu2 }
 0x1ba   : > { %v413_v6 = vadd.f32 %v412_v3, %v389_v4 }
 0x1bc   : > { %v417_v11 = vadd.f32 %v416_v63, %v413_v6 }
 0x1be   : > { %v582_v12 = vmul.f32 -1.442695, %v417_v11 }
 0x1c0   : > { %645 = vpow2.f32 %v582_v12 }
 0x1c6   : > { %v646_v13 = vpop.eup %645 }
 0x1c7   : > { %v421_v14 = vadd.f32 1.0, %v646_v13 }
 0x1c9   : > { %647 = vrcp.f32 %v421_v14  ;;  %v433_v18 = vand.u32 2147483648, %v421_v14  ;;  %v431_v20 = vand.u32 2147483647, %v421_v14  ;;  %vm427_vm7 = vweird.f32 %v421_v14 }
 0x1cb   : > { %v434_v22 = vor.u32 1.1754944e-38, %v433_v18  ;;  %vm432_vm9 = vcmp.eq.f32.partialorder %v431_v20, 8.507059e+37 }
 0x1cf   : > { %v648_v15 = vpop.eup %647 }
 0x1d0   : > { %v423_v16 = vmul.f32 %v648_v15, %v421_v14  ;;  %vm428_vm6 = vweird.f32 %v648_v15 }
 0x1d1   : > { %vm429_vm8 = vmor %vm427_vm7, %vm428_vm6 }
 0x1d2   : > { %v424_v17 = vsub.f32 1.0, %v423_v16 }
 0x1d4   : > { %v425_v19 = vmul.f32 %v648_v15, %v424_v17 }
 0x1d6   : > { %v426_v21 = vadd.f32 %v648_v15, %v425_v19 }
 0x1d8   : > { %v430_v23 = vsel %vm429_vm8, %v648_v15, %v426_v21 }
 0x1d9   : > { %v435_v24 = vsel %vm432_vm9, %v434_v22, %v430_v23 }
 0x1da   : > { %v437_v25 = vperm.slane %v435_v24, 0 }
 0x1dc   : > { %454 = vperm.xlu1 %642, %v437_v25   ;;  %448 = vperm.xlu0 %641, %v437_v25  }
 0x1dd   : > { %442 = vperm.xlu2 %640, %v437_v25  }
 0x1e4   : > { %644 = vset.pattern.permute.xlu0 %v458_v26 }
 0x1e5   : > { %643 = vset.pattern.permute.xlu2 %v458_v26 }
 0x1ed   : > { %460 = vperm.xlu2 %643, %v437_v25  }
 0x237   : > { %v443_v27 = vpop.permute.xlu2 %442 }
 0x238   : > { %v462_v28 = vmul.f32 %v443_v27, %v877_v0  ;;  %v463_v29 = vmul.f32 %v443_v27, %v879_v1 }
 0x23a   : > { %470 = vst [vmem:[%s244_s29] sm:$0xff] %v462_v28 }
 0x23b   : > { %471 = vst [vmem:[%s244_s29 + $0x8] sm:$0xff] %v463_v29 }
 0x247   : > { %v461_v30 = vpop.permute.xlu2 %460 }
 0x248   : > { %v468_v31 = vmul.f32 %v461_v30, %v895_v9  ;;  %v469_v32 = vmul.f32 %v461_v30, %v897_v10 }
 0x24a   : > { %476 = vst [vmem:[%s244_s29 + $0x30] sm:$0xff] %v468_v31 }
 0x24b   : > { %477 = vst [vmem:[%s244_s29 + $0x38] sm:$0xff] %v469_v32 }
 0x24e   : > { %v455_v0 = vpop.permute.xlu1 %454  ;;  %v449_v1 = vpop.permute.xlu0 %448 }
 0x24f   : > { %v466_v33 = vmul.f32 %v455_v0, %v881_v2  ;;  %v467_v34 = vmul.f32 %v455_v0, %v887_v5  ;;  %v464_v9 = vmul.f32 %v449_v1, %v891_v7  ;;  %v465_v10 = vmul.f32 %v449_v1, %v893_v8 }
 0x251   : > { %474 = vst [vmem:[%s244_s29 + $0x20] sm:$0xff] %v466_v33 }
 0x252   : > { %475 = vst [vmem:[%s244_s29 + $0x28] sm:$0xff] %v467_v34 }
 0x253   : > { %472 = vst [vmem:[%s244_s29 + $0x10] sm:$0xff] %v464_v9 }
 0x254   : > { %473 = vst [vmem:[%s244_s29 + $0x18] sm:$0xff] %v465_v10 }
 0x255   : > { %706 = shalt.err (!%p703_p4)
}
 0x256   : > { %s749_s12 = smov 256   ;;  %s750_s25 = smov 16  }
 0x257   : > { %592 = dma.vmem_to_hbm [thread:$0]  (%p831_p11), %s492_s26, 1024, %s494_s8, %s479_s22, %s749_s12, %s749_s12, %s750_s25  }
 0x258 PF: > { %s508_s29 = sand.u32 1, %s733_s18   ;;  %p986_p7 = scmp.ge.s32.totalorder %s745_s21, 2 }
 0x259   : > { %s509_s13 = scalar_lea.sflag [#allocation4], %s508_s29 }
 0x25a   : > { %p599_p5 = pnand %p986_p7, %p835_p12 }
 0x25c   : > { %p600_p8 = pneg %p599_p5 }
 0x25e   : > { %728 = dma.done.wait (%p600_p8), %s509_s13, 1024  }
 0x25f   : > { %730 = vsyncadd (%p600_p8), %s509_s13, 4294966272  ;;  %p18_p10 = scmp.ge.s32.totalorder %s806_s24, 4   ;;  %s987_s18 = smov %s737_s19 }
 0x260   : > { %s988_s19 = smov %s741_s20  ;;  %s989_s20 = smov %s818_s27 }
 0x261   : > { %s990_s21 = smov %s806_s24  ;;  %20 = sbr.rel (!%p18_p10) target bundleno = 5 (0x5), region = 85 }
 0x266   :  { %515 = vsyncpa [#allocation3], 1 }
 0x267   :  { %517 = vsyncpa [#allocation3 + $0x1], 1 }
 0x268   :  { %518 = vsyncpa [#allocation4], 1 }
 0x269   :  { %520 = vsyncpa [#allocation4 + $0x1], 1 }

</bundles_post_ra>
